<compile_context>
chip_gen: v7x
topology: tpu7x:2x2x1
jax: 0.10.0
libtpu: 0.0.40
codegen_flags: <defaults>
</compile_context>

<pallas_src>
import jax
import jax.numpy as jnp
from jax.experimental import pallas as pl
from jax.experimental.pallas import tpu as pltpu


# ------------------------------ fused kernel --------------------------------
def _selfatt_fused_kernel(x_ref, w1t_ref, b1_ref, w2t_ref, b2_ref, o_ref):
    # x_ref:   (1, A, HW)  one full image; HW on lanes, channels on sublanes.
    # w1t_ref: (A, B)      gate-conv weight, transposed.
    # b1_ref:  (1, B)      gate-conv bias.
    # w2t_ref: (A, B)      feat-conv weight, transposed.
    # b2_ref:  (1, B)      feat-conv bias.
    # o_ref:   (1, 1, HW)  lane-dense output.
    x = x_ref[0]                                                  # (A, HW) f32
    hw = x.shape[-1]

    # AdaptiveAvgPool2d((1, 1)): cross-lane mean (XLU).
    pooled = jnp.sum(x, axis=-1, keepdims=True) * (1.0 / hw)      # (A, 1)

    # gate = sigmoid(W1 @ pooled + b1): sublane reduce (VPU) + exp (EUP).
    z = jnp.sum(pooled * w1t_ref[...], axis=0, keepdims=True) + b1_ref[...]
    gate = 1.0 / (1.0 + jnp.exp(-z))                              # (1, B)

    # Gate is spatially constant -> fold it into the feat conv:
    #   out = (gate @ W2) @ x + gate @ b2
    w_eff = jnp.sum(w2t_ref[...] * gate, axis=-1, keepdims=True)  # (A, 1)
    b_eff = jnp.sum(gate * b2_ref[...], axis=-1, keepdims=True)   # (1, 1)

    # VPU broadcast-multiply + tiny sublane reduce over the A channels.
    out = jnp.sum(x * w_eff, axis=0, keepdims=True) + b_eff       # (1, HW)
    o_ref[0] = out.astype(o_ref.dtype)


# --------------------- streaming fallback (large images) --------------------
def _selfatt_stream_kernel(x_ref, w_ref, b_ref, o_ref):
    # x_ref: (1, A, T) one HW tile; w_ref: (1, A, 1); b_ref: (1, 1, 1);
    # o_ref: (1, 1, T) lane-dense output tile.
    x = x_ref[0]                                                  # (A, T)
    w = w_ref[0]                                                  # (A, 1)
    acc = jnp.sum(x * w, axis=0, keepdims=True)                   # (1, T)
    o_ref[0] = (acc + b_ref[0]).astype(o_ref.dtype)


def _pick_hw_tile(hw):
    # Largest lane-dense tile that divides HW; fall back to the full extent
    # (block == full dim satisfies the (8,128) rule for odd sizes).
    for t in (2048, 1024, 512, 256, 128):
        if hw % t == 0:
            return t
    return hw


# --------------------------------- wrapper ----------------------------------
def self_att_pallas(x_nchw, w1, b1, w2, b2, *, fused_bytes_limit=4 * 1024 * 1024):
    """x_nchw: (N, A, H, W); w1, w2: (B, A) (1x1 conv weights); b1, b2: (B,).
       Returns (N, 1, H, W)."""
    N, A, H, W = x_nchw.shape
    HW = H * W
    B = w1.shape[0]

    # NCHW-native flatten — a pure reshape, no transpose / HBM relayout.
    x = x_nchw.reshape(N, A, HW).astype(jnp.float32)              # (N, A, HW)
    w1f = w1.astype(jnp.float32)
    b1f = b1.astype(jnp.float32)
    w2f = w2.astype(jnp.float32)
    b2f = b2.astype(jnp.float32)

    per_image_bytes = A * HW * 4

    if per_image_bytes <= fused_bytes_limit:
        # Fully fused single pass: x is read from HBM exactly once.
        out = pl.pallas_call(
            _selfatt_fused_kernel,
            out_shape=jax.ShapeDtypeStruct((N, 1, HW), jnp.float32),
            grid_spec=pltpu.PrefetchScalarGridSpec(
                num_scalar_prefetch=0,
                grid=(N,),
                in_specs=[
                    pl.BlockSpec((1, A, HW), lambda n: (n, 0, 0)),
                    pl.BlockSpec((A, B), lambda n: (0, 0)),
                    pl.BlockSpec((1, B), lambda n: (0, 0)),
                    pl.BlockSpec((A, B), lambda n: (0, 0)),
                    pl.BlockSpec((1, B), lambda n: (0, 0)),
                ],
                out_specs=pl.BlockSpec((1, 1, HW), lambda n: (n, 0, 0)),
            ),
            compiler_params=pltpu.CompilerParams(
                dimension_semantics=("parallel",)),
        )(x, w1f.T, b1f.reshape(1, B), w2f.T, b2f.reshape(1, B))
    else:
        # Two-pass fallback for images too large to hold per-image in VMEM:
        # tiny gate path in plain JAX, then a lane-dense streaming kernel.
        pooled = jnp.mean(x, axis=-1)                             # (N, A)
        gate = jax.nn.sigmoid(pooled @ w1f.T + b1f)               # (N, B)
        w_eff = (gate @ w2f).reshape(N, A, 1)                     # (N, A, 1)
        b_eff = (gate @ b2f).reshape(N, 1, 1)                     # (N, 1, 1)

        T = _pick_hw_tile(HW)
        out = pl.pallas_call(
            _selfatt_stream_kernel,
            out_shape=jax.ShapeDtypeStruct((N, 1, HW), jnp.float32),
            grid_spec=pltpu.PrefetchScalarGridSpec(
                num_scalar_prefetch=0,
                grid=(N, HW // T),
                in_specs=[
                    pl.BlockSpec((1, A, T), lambda n, t: (n, 0, t)),
                    pl.BlockSpec((1, A, 1), lambda n, t: (n, 0, 0)),
                    pl.BlockSpec((1, 1, 1), lambda n, t: (n, 0, 0)),
                ],
                out_specs=pl.BlockSpec((1, 1, T), lambda n, t: (n, 0, t)),
            ),
            compiler_params=pltpu.CompilerParams(
                dimension_semantics=("parallel", "parallel")),
        )(x, w_eff, b_eff)

    # (N, 1, HW) -> (N, 1, H, W): pure reshape, no transpose.
    return out.reshape(N, 1, H, W)


# ------------------------------- reference ----------------------------------
def self_att_reference(x_nchw, w1, b1, w2, b2):
    """Pure-JAX reference mirroring the PyTorch forward."""
    pooled = jnp.mean(x_nchw, axis=(2, 3))                        # (N, A)
    gate = jax.nn.sigmoid(pooled @ w1.T + b1)                     # (N, B)
    xt = jnp.transpose(x_nchw, (0, 2, 3, 1))                      # (N, H, W, A)
    feat = xt @ w2.T + b2                                         # (N, H, W, B)
    out = jnp.sum(feat * gate[:, None, None, :], axis=-1, keepdims=True)
    return jnp.transpose(out, (0, 3, 1, 2))                       # (N, 1, H, W)


if __name__ == "__main__":
    # Small shapes: a=4 in-channels, b=8 out-channels, batch=2, 16x16 spatial.
    N, A, B_out, H, W = 2, 4, 8, 16, 16

    key = jax.random.PRNGKey(0)
    kx, kw1, kb1, kw2, kb2 = jax.random.split(key, 5)
    x = jax.random.normal(kx, (N, A, H, W), dtype=jnp.float32)
    # Conv2d(a, b, 1) parameters (1x1 kernels stored as (B, A)).
    w1 = jax.random.normal(kw1, (B_out, A), dtype=jnp.float32) * 0.1
    b1 = jax.random.normal(kb1, (B_out,), dtype=jnp.float32) * 0.1
    w2 = jax.random.normal(kw2, (B_out, A), dtype=jnp.float32) * 0.1
    b2 = jax.random.normal(kb2, (B_out,), dtype=jnp.float32) * 0.1

    out = jax.block_until_ready(self_att_pallas(x, w1, b1, w2, b2))
    ref = jax.block_until_ready(self_att_reference(x, w1, b1, w2, b2))

    assert out.shape == (N, 1, H, W), out.shape
    assert jnp.allclose(out, ref, atol=1e-5, rtol=1e-5), \
        float(jnp.max(jnp.abs(out - ref)))
    print("KERNEL_OK")
</pallas_src>

<mosaic_0001>
module attributes {stable_mosaic.version = 11 : i64} {
  func.func @_selfatt_fused_kernel(%arg0: i32, %arg1: memref<1x4x256xf32, #tpu.memory_space<vmem>>, %arg2: memref<4x8xf32, #tpu.memory_space<vmem>>, %arg3: memref<1x8xf32, #tpu.memory_space<vmem>>, %arg4: memref<4x8xf32, #tpu.memory_space<vmem>>, %arg5: memref<1x8xf32, #tpu.memory_space<vmem>>, %arg6: memref<1x1x256xf32, #tpu.memory_space<vmem>>) attributes {dimension_semantics = [#tpu.dimension_semantics<parallel>], iteration_bounds = array<i64: 2>, scalar_prefetch = 0 : i64, scratch_operands = 0 : i64, tpu.core_type = #tpu.core_type<tc>, window_params = [{transform_indices = @transform_0, window_bounds = array<i64: 1, 4, 256>}, {pipeline_mode = #tpu.pipeline_mode<synchronous>, transform_indices = @transform_1, window_bounds = array<i64: 4, 8>}, {pipeline_mode = #tpu.pipeline_mode<synchronous>, transform_indices = @transform_2, window_bounds = array<i64: 1, 8>}, {pipeline_mode = #tpu.pipeline_mode<synchronous>, transform_indices = @transform_3, window_bounds = array<i64: 4, 8>}, {pipeline_mode = #tpu.pipeline_mode<synchronous>, transform_indices = @transform_4, window_bounds = array<i64: 1, 8>}, {transform_indices = @transform_5, window_bounds = array<i64: 1, 1, 256>}]} {
    %c0 = arith.constant 0 : index
    %c0_0 = arith.constant 0 : index
    %c0_1 = arith.constant 0 : index
    %0 = vector.load %arg1[%c0, %c0_0, %c0_1] : memref<1x4x256xf32, #tpu.memory_space<vmem>>, vector<1x4x256xf32>
    %1 = vector.shape_cast %0 : vector<1x4x256xf32> to vector<4x256xf32>
    %cst = arith.constant dense<0.000000e+00> : vector<4xf32>
    %2 = vector.multi_reduction <add>, %1, %cst [1] : vector<4x256xf32> to vector<4xf32>
    %3 = vector.shape_cast %2 : vector<4xf32> to vector<4x1xf32>
    %cst_2 = arith.constant 3.906250e-03 : f32
    %4 = vector.broadcast %cst_2 : f32 to vector<4x1xf32>
    %5 = arith.mulf %3, %4 : vector<4x1xf32>
    %c0_3 = arith.constant 0 : index
    %c0_4 = arith.constant 0 : index
    %6 = vector.load %arg2[%c0_3, %c0_4] : memref<4x8xf32, #tpu.memory_space<vmem>>, vector<4x8xf32>
    %7 = vector.broadcast %5 : vector<4x1xf32> to vector<4x8xf32>
    %8 = arith.mulf %7, %6 : vector<4x8xf32>
    %cst_5 = arith.constant dense<0.000000e+00> : vector<8xf32>
    %9 = vector.multi_reduction <add>, %8, %cst_5 [0] : vector<4x8xf32> to vector<8xf32>
    %10 = vector.shape_cast %9 : vector<8xf32> to vector<1x8xf32>
    %c0_6 = arith.constant 0 : index
    %c0_7 = arith.constant 0 : index
    %11 = vector.load %arg3[%c0_6, %c0_7] : memref<1x8xf32, #tpu.memory_space<vmem>>, vector<1x8xf32>
    %12 = arith.addf %10, %11 : vector<1x8xf32>
    %cst_8 = arith.constant 0.000000e+00 : f32
    %13 = vector.broadcast %cst_8 : f32 to vector<1x8xf32>
    %14 = arith.subf %13, %12 : vector<1x8xf32>
    %15 = math.exp %14 : vector<1x8xf32>
    %cst_9 = arith.constant 1.000000e+00 : f32
    %16 = vector.broadcast %cst_9 : f32 to vector<1x8xf32>
    %17 = arith.addf %16, %15 : vector<1x8xf32>
    %cst_10 = arith.constant 1.000000e+00 : f32
    %18 = vector.broadcast %cst_10 : f32 to vector<1x8xf32>
    %19 = arith.divf %18, %17 : vector<1x8xf32>
    %c0_11 = arith.constant 0 : index
    %c0_12 = arith.constant 0 : index
    %20 = vector.load %arg4[%c0_11, %c0_12] : memref<4x8xf32, #tpu.memory_space<vmem>>, vector<4x8xf32>
    %21 = vector.broadcast %19 : vector<1x8xf32> to vector<4x8xf32>
    %22 = arith.mulf %20, %21 : vector<4x8xf32>
    %cst_13 = arith.constant dense<0.000000e+00> : vector<4xf32>
    %23 = vector.multi_reduction <add>, %22, %cst_13 [1] : vector<4x8xf32> to vector<4xf32>
    %24 = vector.shape_cast %23 : vector<4xf32> to vector<4x1xf32>
    %c0_14 = arith.constant 0 : index
    %c0_15 = arith.constant 0 : index
    %25 = vector.load %arg5[%c0_14, %c0_15] : memref<1x8xf32, #tpu.memory_space<vmem>>, vector<1x8xf32>
    %26 = arith.mulf %19, %25 : vector<1x8xf32>
    %cst_16 = arith.constant dense<0.000000e+00> : vector<1xf32>
    %27 = vector.multi_reduction <add>, %26, %cst_16 [1] : vector<1x8xf32> to vector<1xf32>
    %28 = vector.shape_cast %27 : vector<1xf32> to vector<1x1xf32>
    %29 = vector.broadcast %24 : vector<4x1xf32> to vector<4x256xf32>
    %30 = arith.mulf %1, %29 : vector<4x256xf32>
    %cst_17 = arith.constant dense<0.000000e+00> : vector<256xf32>
    %31 = vector.multi_reduction <add>, %30, %cst_17 [0] : vector<4x256xf32> to vector<256xf32>
    %32 = vector.shape_cast %31 : vector<256xf32> to vector<1x256xf32>
    %33 = vector.broadcast %28 : vector<1x1xf32> to vector<1x256xf32>
    %34 = arith.addf %32, %33 : vector<1x256xf32>
    %c0_18 = arith.constant 0 : index
    %c0_19 = arith.constant 0 : index
    %c0_20 = arith.constant 0 : index
    %35 = vector.load %arg6[%c0_18, %c0_19, %c0_20] : memref<1x1x256xf32, #tpu.memory_space<vmem>>, vector<1x1x256xf32>
    %36 = vector.shape_cast %35 : vector<1x1x256xf32> to vector<1x256xf32>
    %37 = vector.shape_cast %34 : vector<1x256xf32> to vector<1x1x256xf32>
    tpu.vector_store %arg6[%c0_18, %c0_19, %c0_20], %37 {strides = array<i32>} : memref<1x1x256xf32, #tpu.memory_space<vmem>>, vector<1x1x256xf32>,
    return
  }
  func.func @transform_0(%arg0: i32) -> (i32, i32, i32) {
    %c0_i32 = arith.constant 0 : i32
    %c0_i32_0 = arith.constant 0 : i32
    %c0_i32_1 = arith.constant 0 : i32
    return %arg0, %c0_i32, %c0_i32_0 : i32, i32, i32
  }
  func.func @transform_1(%arg0: i32) -> (i32, i32) {
    %c0_i32 = arith.constant 0 : i32
    %c0_i32_0 = arith.constant 0 : i32
    %c0_i32_1 = arith.constant 0 : i32
    return %c0_i32, %c0_i32_0 : i32, i32
  }
  func.func @transform_2(%arg0: i32) -> (i32, i32) {
    %c0_i32 = arith.constant 0 : i32
    %c0_i32_0 = arith.constant 0 : i32
    %c0_i32_1 = arith.constant 0 : i32
    return %c0_i32, %c0_i32_0 : i32, i32
  }
  func.func @transform_3(%arg0: i32) -> (i32, i32) {
    %c0_i32 = arith.constant 0 : i32
    %c0_i32_0 = arith.constant 0 : i32
    %c0_i32_1 = arith.constant 0 : i32
    return %c0_i32, %c0_i32_0 : i32, i32
  }
  func.func @transform_4(%arg0: i32) -> (i32, i32) {
    %c0_i32 = arith.constant 0 : i32
    %c0_i32_0 = arith.constant 0 : i32
    %c0_i32_1 = arith.constant 0 : i32
    return %c0_i32, %c0_i32_0 : i32, i32
  }
  func.func @transform_5(%arg0: i32) -> (i32, i32, i32) {
    %c0_i32 = arith.constant 0 : i32
    %c0_i32_0 = arith.constant 0 : i32
    %c0_i32_1 = arith.constant 0 : i32
    return %arg0, %c0_i32, %c0_i32_0 : i32, i32, i32
  }
}

</mosaic_0001>

<bundles_post_ra>
// kernel: tpu_custom_call.1
= control target key start
LH: loop header
LB: loop body
LE: loop exit
PB: predicated region body
PF: predicated region fallthrough
CT: control target
= control target key end

     0   :  { %10 = vsyncpa [#allocation3], 0  ;;  %s909_s0 = inlined_call_operand.hbm [shape: f32[2,4,256], index: 0, kind: input, shape index: {}]   ;;  %s910_s1 = inlined_call_operand.hbm [shape: f32[4,8], index: 1, kind: input, shape index: {}]   ;;  %s911_s2 = inlined_call_operand.vmem [shape: f32[1,8], index: 2, kind: input, shape index: {}]   ;;  %s912_s3 = inlined_call_operand.vmem [shape: f32[4,8], index: 3, kind: input, shape index: {}]   ;;  %s913_s4 = inlined_call_operand.vmem [shape: f32[1,8], index: 4, kind: input, shape index: {}]   ;;  %s914_s5 = inlined_call_operand.hbm [shape: f32[2,1,256], index: 5, kind: output, shape index: {}]  }
   0x1   :  { %12 = vsyncpa [#allocation3 + $0x1], 0 }
   0x2   :  { %13 = vsyncpa [#allocation6], 0 }
   0x3   :  { %14 = vsyncpa [#allocation4], 0 }
   0x4   :  { %16 = vsyncpa [#allocation4 + $0x1], 0  ;;  %s692_s18 = smov 0   ;;  %s694_s19 = smov 0  }
   0x5   :  { %s696_s20 = smov 0   ;;  %s698_s21 = smov 0  }
   0x6 LB: > { %s713_s22 = sadd.s32 4294967295, %s655_s21   ;;  %s445_s23 = sadd.s32 4294967294, %s655_s21   ;;  %s655_s21 = sphi %s698_s21, %s938_s21   ;;  %s651_s20 = sphi %s696_s20, %s937_s20   ;;  %s647_s19 = sphi %s694_s19, %s936_s19   ;;  %s643_s18 = sphi %s692_s18, %s935_s18  }
   0x7   : > { %p42_p0 = scmp.ne.s32.totalorder %s647_s19, %s643_s18  ;;  %p915_p1 = scmp.eq.s32.totalorder %s713_s22, 0 }
   0x8   : > { %p156_p3 = scmp.eq.s32.totalorder %s445_s23, 1  ;;  %p446_p5 = scmp.ge.s32.totalorder %s655_s21, 1 }
   0x9   : > { %p722_p4 = por %p915_p1, %p42_p0  ;;  %p163_p7 = scmp.lt.s32.totalorder %s655_s21, 3 }
   0xa   : > { %p727_p6 = por %p156_p3, %p42_p0  ;;  %s657_s27 = smov [#allocation5]  }
   0xb   : > { %s918_s24 = scalar_select %p722_p4, 1, 0 }
   0xc   : > { %s919_s25 = scalar_select %p727_p6, 1, 0 }
   0xd   : > { %p732_p8 = pnand %p446_p5, %p163_p7  ;;  %s176_s28 = sshll.u32 %s657_s27, 4  ;;  %s177_s28 = int_to_ptr.vmem [resolvable:$true] %s176_s28 }
   0xe   : > { %s740_s29 = sadd.s32 1, %s655_s21   ;;  %s29_s8 = sadd.s32 1, %s651_s20 }
   0xf   : > { %s920_s26 = scalar_select %p732_p8, 1, 0 }
  0x10   : > { %p471_p10 = pneg %p732_p8  ;;  %s26_s6 = ssub.s32 %s655_s21, %s740_s29 }
  0x11   : > { %p750_p12 = scmp.eq.s32.totalorder %s26_s6, 0  ;;  %s527_s11 = scalar_lea.hbm %s910_s1, 64 }
  0x12   : > { %p744_p11 = pnand %p471_p10, %p915_p1  ;;  %p528_p0 = scmp.ne.s32.totalorder %s910_s1, %s527_s11 }
  0x13   : > { %s922_s7 = scalar_select %p750_p12, 1, 0 }
  0x14   : > { %p529_p3 = pneg %p744_p11  ;;  %p534_p10 = scmp.lt.u32.totalorder %s527_s11, %s910_s1 }
  0x16   : > { %p530_p5 = pnand %p529_p3, %p528_p0 }
  0x18   : > { %p531_p7 = pneg %p530_p5 }
  0x1a   : > { %p536_p9 = pnand %p534_p10, %p531_p7 }
  0x1c   : > { %539 = shalt.err (!%p536_p9)
}
  0x1d   : > { %s540_s16 = scalar_lea.vmem %s177_s28, 64  ;;  %p548_p6 = scmp.lt.s32.totalorder %s177_s28, %s177_s28 }
  0x1e   : > { %p541_p1 = scmp.ne.s32.totalorder %s177_s28, %s540_s16  ;;  %p549_p4 = scmp.lt.s32.totalorder %s540_s16, %s540_s16 }
  0x20   : > { %p543_p2 = pnand %p541_p1, %p529_p3  ;;  %p550_p8 = por %p549_p4, %p548_p6 }
  0x22   : > { %p544_p13 = pneg %p543_p2 }
  0x24   : > { %p551_p12 = pnand %p550_p8, %p544_p13 }
  0x26   : > { %554 = shalt.err (!%p551_p12)
}
  0x27   : > { %474 = dma.hbm_to_vmem [thread:$0]  (!%p744_p11), %s910_s1, 64, %s177_s28, [#allocation6]  }
  0x28   : > { %p923_p1 = scmp.ne.s32.totalorder %s922_s7, 0  ;;  %p37_p2 = scmp.eq.s32.totalorder %s655_s21, 0 }
  0x29   : > { %p924_p4 = scmp.ne.s32.totalorder %s651_s20, %s647_s19  ;;  %p925_p6 = scmp.eq.s32.totalorder %s713_s22, 1 }
  0x2a   : > { %s776_s27 = scalar_select %p923_p1, %s651_s20, %s29_s8  }
  0x2b   : > { %p784_p8 = por %p925_p6, %p924_p4  ;;  %p484_p9 = scmp.lt.s32.totalorder %s655_s21, 2 }
  0x2c   : > { %s196_s6 = sand.u32 1, %s651_s20   ;;  %p927_p12 = pmov %p924_p4 }
  0x2d   : > { %s449_s9 = sshll.u32 %s196_s6, 3  ;;  %s461_s10 = sshll.u32 %s655_s21, 7 }
  0x2e   : > { %p38_p13 = por %p37_p2, %p927_p12  ;;  %s797_s28 = scalar_lea.hbm %s909_s0, %s461_s10 }
  0x2f   : > { %s200_s7 = scalar_lea.vmem [#allocation2], %s449_s9  ;;  %s197_s14 = scalar_lea.sflag [#allocation3], %s196_s6 }
  0x30   : > { %s208_s8 = sshll.u32 %s200_s7, 4  ;;  %p799_p11 = pnand %p484_p9, %p38_p13  ;;  %s803_s8 = int_to_ptr.vmem [resolvable:$true] %s208_s8 }
  0x31   : > { %s555_s15 = scalar_lea.hbm %s797_s28, 128  ;;  %s560_s23 = scalar_lea.hbm %s909_s0, 256 }
  0x32   : > { %p556_p0 = scmp.ne.s32.totalorder %s797_s28, %s555_s15  ;;  %p557_p3 = pneg %p799_p11 }
  0x33   : > { %p561_p10 = scmp.lt.u32.totalorder %s797_s28, %s909_s0  ;;  %p562_p1 = scmp.lt.u32.totalorder %s560_s23, %s555_s15 }
  0x34   : > { %p558_p5 = pnand %p557_p3, %p556_p0  ;;  %p564_p4 = scmp.lt.u32.totalorder %s555_s15, %s797_s28 }
  0x35   : > { %p563_p2 = por %p562_p1, %p561_p10 }
  0x36   : > { %p559_p7 = pneg %p558_p5 }
  0x37   : > { %p565_p6 = por %p564_p4, %p563_p2 }
  0x39   : > { %p566_p9 = pnand %p565_p6, %p559_p7 }
  0x3b   : > { %569 = shalt.err (!%p566_p9)
}
  0x3c   : > { %s570_s6 = scalar_lea.vmem %s803_s8, 128  ;;  %s658_s11 = smov [#allocation2]  }
  0x3d   : > { %p571_p12 = scmp.ne.s32.totalorder %s803_s8, %s570_s6  ;;  %s575_s12 = sshll.u32 %s658_s11, 4  ;;  %s576_s12 = int_to_ptr.vmem [resolvable:$false] %s575_s12 }
  0x3e   : > { %s577_s7 = scalar_lea.vmem %s576_s12, 256  ;;  %p578_p5 = scmp.lt.s32.totalorder %s803_s8, %s576_s12 }
  0x3f   : > { %p573_p13 = pnand %p571_p12, %p557_p3  ;;  %p579_p10 = scmp.lt.s32.totalorder %s577_s7, %s570_s6 }
  0x41   : > { %p574_p0 = pneg %p573_p13  ;;  %p580_p1 = por %p579_p10, %p578_p5 }
  0x43   : > { %p581_p2 = pnand %p580_p1, %p574_p0 }
  0x45   : > { %584 = shalt.err (!%p581_p2)
}
  0x46   : > { %478 = dma.hbm_to_vmem [thread:$0]  (!%p799_p11), %s797_s28, 128, %s803_s8, %s197_s14  }
  0x47   : > { %p929_p7 = scmp.ne.s32.totalorder %s920_s26, 0 }
  0x48   : > { %s833_s15 = sand.u32 (!%p929_p7), 1, %s647_s19   ;;  %p930_p3 = scmp.ne.s32.totalorder (!%p929_p7), %s918_s24, 0 }
  0x49   : > { %217 = sbr.rel (%p929_p7) target bundleno = 467 (0x1d3), region = 40  ;;  %s453_s16 = sshll.u32 (!%p929_p7), %s833_s15, 3 }
  0x4a   : > { %s220_s17 = scalar_lea.sflag (!%p929_p7), [#allocation3], %s833_s15  ;;  %s223_s23 = scalar_lea.vmem (!%p929_p7), [#allocation2], %s453_s16 }
  0x50   : > { %630 = dma.done.wait (%p930_p3), %s220_s17, 128  }
  0x51   : > { %632 = vsyncadd (%p930_p3), %s220_s17, 4294967168  ;;  %p931_p4 = scmp.eq.s32.totalorder %s713_s22, 0 }
  0x53   : > { %634 = dma.done.wait (%p931_p4), [#allocation6], 64   ;;  %p932_p11 = pmov %p931_p4 }
  0x54   : > { %vm258_vm0 = vcmask 1043456   ;;  %v254_v0 = vld [vmem:[%s223_s23] sm:$0xff]  ;;  %v265_v5 = vld [vmem:[#allocation5] sm:$0xf]  ;;  %vm267_vm1 = vcmask 60416   ;;  %v284_v22 = vlaneseq  ;;  %vm294_vm2 = vcmask 57344  }
  0x55   : > { %636 = vsyncadd (%p932_p11), [#allocation6], 4294967232  ;;  %v256_v1 = vcombine.high %v254_v0, %v254_v0  ;;  %v259_v2 = vsel %vm258_vm0, %v254_v0, 0.0  ;;  %v275_v15 = vld [vmem:[%s911_s2] sm:$0x1]  ;;  %s455_s9 = sshll.u32 %s833_s15, 1 }
  0x56   : > { %v285_v23 = vshrl.u32 %v284_v22, 7  ;;  %v292_v25 = vld [vmem:[%s913_s4] sm:$0x1]  ;;  %v659_v33 = vmov 839922192   ;;  %s462_s10 = sshll.u32 %s713_s22, 5 }
  0x57   : > { %v260_v3 = vsel %vm258_vm0, %v256_v1, 0.0  ;;  %v283_v27 = vld [vmem:[%s912_s3] sm:$0xf]  ;;  %v300_v34 = vunpack.c.l.s4 %v659_v33  ;;  %v660_v48 = vmov 1966171168   ;;  %s253_s6 = scalar_lea.vmem [#allocation7], %s455_s9  ;;  %s865_s16 = scalar_lea.hbm %s914_s5, %s462_s10 }
  0x58   : > { %v261_v4 = vadd.f32 %v260_v3, %v259_v2  ;;  %v286_v24 = vsub.s32 0, %v285_v23  ;;  %v331_v49 = vunpack.c.l.s4 %v660_v48  ;;  %s365_s11 = sshll.u32 %s253_s6, 4  ;;  %vm347_vm3 = vcmp.lt.s32.totalorder %v284_v22, 256  ;;  %s351_s17 = scalar_lea.sflag [#allocation4], %s833_s15  ;;  %s867_s11 = int_to_ptr.vmem [resolvable:$true] %s365_s11 }
  0x59   : > { %v301_v35 = vunpack.c.0.s8 %v300_v34  ;;  %s585_s23 = scalar_lea.vmem %s867_s11, 32  ;;  %s661_s22 = smov [#allocation7]  }
  0x5a   : > { %262 = vadd.xlane.f32.xlu0 %v261_v4  ;;  %v332_v54 = vunpack.c.0.s8 %v331_v49  ;;  %p586_p6 = scmp.ne.s32.totalorder %s867_s11, %s585_s23  ;;  %s589_s24 = sshll.u32 %s661_s22, 4  ;;  %s590_s24 = int_to_ptr.vmem [resolvable:$false] %s589_s24 }
  0x5b   : > { %v304_v36 = vsub.s32 %v301_v35, %v285_v23  ;;  %s591_s26 = scalar_lea.vmem %s590_s24, 64  ;;  %p592_p13 = scmp.lt.s32.totalorder %s867_s11, %s590_s24 }
  0x5c   : > { %v335_v59 = vsub.s32 %v332_v54, %v285_v23  ;;  %p587_p9 = pnand %p586_p6, %p784_p8  ;;  %p593_p0 = scmp.lt.s32.totalorder %s591_s26, %s585_s23 }
  0x5e   : > { %p588_p12 = pneg %p587_p9  ;;  %p594_p5 = por %p593_p0, %p592_p13 }
  0x60   : > { %p595_p10 = pnand %p594_p5, %p588_p12 }
  0xe7   : > { %v263_v6 = vpop.xlane.xlu0 %262 }
  0xe8   : > { %v264_v7 = vmul.f32 0.00390625, %v263_v6 }
  0xea   : > { %v266_v8 = vmul.f32 %v265_v5, %v264_v7 }
  0xec   : > { %v268_v9 = vsel %vm267_vm1, %v266_v8, 0.0 }
  0xed   : > { %v269_v10 = vrot.slane %v268_v9, 4 }
  0xef   : > { %v270_v11 = vadd.f32 %v269_v10, %v268_v9 }
  0xf1   : > { %v271_v12 = vrot.slane %v270_v11, 2 }
  0xf3   : > { %v272_v13 = vadd.f32 %v271_v12, %v270_v11 }
  0xf5   : > { %v273_v14 = vrot.slane %v272_v13, 1 }
  0xf7   : > { %v274_v16 = vadd.f32 %v273_v14, %v272_v13 }
  0xf9   : > { %v276_v17 = vadd.f32 %v275_v15, %v274_v16 }
  0xfb   : > { %v277_v18 = vsub.f32 0.0, %v276_v17 }
  0xfd   : > { %v278_v19 = vmul.f32 1.442695, %v277_v18 }
  0xff   : > { %523 = vpow2.f32 %v278_v19 }
 0x109   : > { %v524_v20 = vpop.eup %523 }
 0x10a   : > { %v280_v21 = vadd.f32 1.0, %v524_v20 }
 0x10c   : > { %525 = vrcp.f32 %v280_v21 }
 0x116   : > { %v526_v26 = vpop.eup %525 }
 0x117   : > { %v293_v28 = vmul.f32 %v526_v26, %v292_v25  ;;  %v287_v29 = vrot.slane %v526_v26, %v286_v24 }
 0x119   : > { %v295_v30 = vsel %vm294_vm2, %v293_v28, 0.0  ;;  %v288_v31 = vmul.f32 %v287_v29, %v283_v27 }
 0x11a   : > { %296 = vadd.xlane.f32.xlu1 %v295_v30 }
 0x11b   : > { %v289_v32 = vsel %vm267_vm1, %v288_v31, 0.0 }
 0x11c   : > { %290 = vadd.xlane.f32.xlu0 %v289_v32 }
 0x1a7   : > { %v297_v58 = vpop.xlane.xlu1 %296 }
 0x1a9   : > { %v291_v37 = vpop.xlane.xlu0 %290 }
 0x1aa   : > { %v305_v38 = vrot.slane %v291_v37, %v304_v36 }
 0x1ac   : > { %v307_v39 = vmul.f32 %v305_v38, %v254_v0 }
 0x1ae   : > { %v309_v40 = vcombine.high %v307_v39, %v307_v39  ;;  %v311_v41 = vsel %vm258_vm0, %v307_v39, 0.0 }
 0x1af   : > { %v312_v42 = vrot.slane %v311_v41, 4 }
 0x1b0   : > { %v318_v43 = vsel %vm258_vm0, %v309_v40, 0.0 }
 0x1b1   : > { %v313_v44 = vadd.f32 %v312_v42, %v311_v41  ;;  %v319_v45 = vrot.slane %v318_v43, 4 }
 0x1b3   : > { %v314_v46 = vrot.slane %v313_v44, 2  ;;  %v320_v47 = vadd.f32 %v319_v45, %v318_v43 }
 0x1b5   : > { %v315_v50 = vadd.f32 %v314_v46, %v313_v44  ;;  %v321_v51 = vrot.slane %v320_v47, 2 }
 0x1b7   : > { %v316_v52 = vrot.slane %v315_v50, 1  ;;  %v322_v53 = vadd.f32 %v321_v51, %v320_v47 }
 0x1b9   : > { %v317_v55 = vadd.f32 %v316_v52, %v315_v50  ;;  %v323_v56 = vrot.slane %v322_v53, 1 }
 0x1bb   : > { %v324_v57 = vadd.f32 %v323_v56, %v322_v53  ;;  %v325_v60 = vadd.f32 %v317_v55, %v297_v58 }
 0x1bd   : > { %v326_v61 = vadd.f32 %v324_v57, %v297_v58 }
 0x1bf   : > { %v329_v62 = vcombine.low %v325_v60, %v326_v61 }
 0x1c1   : > { %v336_v63 = vrot.slane %v329_v62, %v335_v59 }
 0x1c3   : > { %v343_v0 = vrot.slane %v336_v63, %v335_v59 }
 0x1c5   : > { %349 = vst.msk [vmem:[%s253_s6] sm:$0x3] %vm347_vm3, %v343_v0 }
 0x1c6   : > { %598 = shalt.err (!%p595_p10)
}
 0x1c7   : > { %s599_s15 = scalar_lea.hbm %s865_s16, 32  ;;  %s603_s13 = scalar_lea.hbm %s914_s5, 64 }
 0x1c8   : > { %p600_p1 = scmp.ne.s32.totalorder %s865_s16, %s599_s15  ;;  %p604_p3 = scmp.lt.u32.totalorder %s865_s16, %s914_s5 }
 0x1c9   : > { %p605_p4 = scmp.lt.u32.totalorder %s603_s13, %s599_s15  ;;  %p607_p6 = scmp.lt.u32.totalorder %s599_s15, %s865_s16 }
 0x1ca   : > { %p601_p2 = pnand %p600_p1, %p784_p8 }
 0x1cb   : > { %p606_p11 = por %p605_p4, %p604_p3 }
 0x1cc   : > { %p602_p7 = pneg %p601_p2 }
 0x1cd   : > { %p608_p9 = por %p607_p6, %p606_p11 }
 0x1cf   : > { %p609_p12 = pnand %p608_p9, %p602_p7 }
 0x1d1   : > { %612 = shalt.err (!%p609_p12)
}
 0x1d2   : > { %469 = dma.vmem_to_hbm [thread:$0]  (%p784_p8), %s867_s11, 32, %s865_s16, %s351_s17  }
 0x1d3 PF: > { %s377_s10 = sand.u32 1, %s643_s18   ;;  %p933_p13 = scmp.ne.s32.totalorder %s919_s25, 0 }
 0x1d4   : > { %p934_p0 = scmp.ge.s32.totalorder %s655_s21, 2  ;;  %s378_s6 = scalar_lea.sflag [#allocation4], %s377_s10 }
 0x1d6   : > { %p480_p5 = pnand %p934_p0, %p933_p13 }
 0x1d8   : > { %638 = dma.done.wait (!%p480_p5), %s378_s6, 32  }
 0x1d9   : > { %640 = vsyncadd (!%p480_p5), %s378_s6, 4294967264  ;;  %p19_p10 = scmp.ge.s32.totalorder %s740_s29, 4   ;;  %s935_s18 = smov %s647_s19 }
 0x1da   : > { %s936_s19 = smov %s651_s20  ;;  %s937_s20 = smov %s776_s27 }
 0x1db   : > { %s938_s21 = smov %s740_s29  ;;  %21 = sbr.rel (!%p19_p10) target bundleno = 6 (0x6), region = 89 }
 0x1e2   :  { %383 = vsyncpa [#allocation3], 1 }
 0x1e3   :  { %385 = vsyncpa [#allocation3 + $0x1], 1 }
 0x1e4   :  { %386 = vsyncpa [#allocation6], 1 }
 0x1e5   :  { %387 = vsyncpa [#allocation4], 1 }
 0x1e6   :  { %389 = vsyncpa [#allocation4 + $0x1], 1 }

</bundles_post_ra>
